<compile_context>
chip_gen: v6e
topology: v6e:2x2x1
jax: 0.10.0
libtpu: 0.0.40
codegen_flags: <defaults>
</compile_context>

<pallas_src>
import functools
import math

import jax
import jax.numpy as jnp
import numpy as np
from jax.experimental import pallas as pl
from jax.experimental.pallas import tpu as pltpu


def _mlrsnet_kernel(
    x_ref, hx_ref, cx_ref,
    w1i_ref, b1i_ref, w2i_ref, b2i_ref,
    w1h_ref, b1h_ref, w2h_ref, b2h_ref,
    w3_ref, b3_ref,
    out_ref, hx_out_ref, cx_out_ref,
    *, num_layers, hidden,
):
    """Fused MLRSNet forward.

    x_ref:   (B, H)        layer-0 input, zero-padded from (B, 1) to (B, H)
    hx_ref:  (L, B, H)     previous hidden states
    cx_ref:  (L, B, H)     previous cell states
    w1i/w1h: (L, H, H)     first linears of i2h / h2h branches, (in, out) layout
    b1i/b1h: (L, 1, H)
    w2i/w2h: (L, H, 4H)    gate linears, (in, out) layout
    b2i/b2h: (L, 1, 4H)
    w3_ref:  (1, H)        head Linear(H, 1) weight (row vector)
    b3_ref:  (1, 1)
    outputs: out (B, 1), hx_new (L, B, H), cx_new (L, B, H)
    """
    H = hidden

    def sigmoid(v):
        return 1.0 / (1.0 + jnp.exp(-v))

    inp = x_ref[...]                                      # (B, H)
    for l in range(num_layers):                           # static, unrolled
        # i2h branch: Linear -> ReLU -> Linear(4H), lane-dense (B, 4H) matmul.
        a = jnp.maximum(
            jnp.dot(inp, w1i_ref[l], preferred_element_type=jnp.float32)
            + b1i_ref[l], 0.0)
        i2h = jnp.dot(a, w2i_ref[l], preferred_element_type=jnp.float32) + b2i_ref[l]

        # h2h branch: Linear -> ReLU -> Linear(4H).
        b = jnp.maximum(
            jnp.dot(hx_ref[l], w1h_ref[l], preferred_element_type=jnp.float32)
            + b1h_ref[l], 0.0)
        h2h = jnp.dot(b, w2h_ref[l], preferred_element_type=jnp.float32) + b2h_ref[l]

        g = i2h + h2h                                     # (B, 4H); 4H == 128 lanes
        in_gate = sigmoid(g[:, 0:H])
        forget_gate = sigmoid(g[:, H:2 * H] - 1.0)
        out_gate = sigmoid(g[:, 2 * H:3 * H])
        in_transform = jnp.tanh(g[:, 3 * H:4 * H])

        c_new = forget_gate * cx_ref[l] + in_gate * in_transform
        h_new = out_gate * jnp.tanh(c_new)

        hx_out_ref[l] = h_new.astype(hx_out_ref.dtype)
        cx_out_ref[l] = c_new.astype(cx_out_ref.dtype)
        inp = h_new                                       # feeds next layer

    # Head: Linear(H, 1) + sigmoid, done as a lane reduction (avoids N=1 matmul).
    logits = jnp.sum(inp * w3_ref[...], axis=1, keepdims=True) + b3_ref[...]
    out_ref[...] = sigmoid(logits).astype(out_ref.dtype)


def mlrsnet_forward(x, layer_params, head_w, head_b, hx, cx):
    """MLRSNet forward: returns (out (B,1), hx_new (L,B,H), cx_new (L,B,H)).

    x:            (B, n_in0) with n_in0 == 1 (as in the torch module)
    layer_params: length-L list of dicts with PyTorch-layout weights:
        w1i (H, n_in_l), b1i (H,), w2i (4H, H), b2i (4H,),
        w1h (H, H),      b1h (H,), w2h (4H, H), b2h (4H,)
    head_w: (1, H), head_b: (1,)
    hx, cx: (L, B, H)
    """
    L = len(layer_params)
    B = x.shape[0]
    H = hx.shape[-1]

    # --- glue only (tiny tensors): transpose to (in, out), stack, zero-pad ---
    def in_major(w):                      # (out, in) -> (in, out), pad in-dim to H
        wt = jnp.transpose(w)
        pad = H - wt.shape[0]
        if pad > 0:
            wt = jnp.pad(wt, ((0, pad), (0, 0)))
        return wt

    w1i = jnp.stack([in_major(p["w1i"]) for p in layer_params])          # (L, H, H)
    b1i = jnp.stack([p["b1i"].reshape(1, H) for p in layer_params])      # (L, 1, H)
    w2i = jnp.stack([jnp.transpose(p["w2i"]) for p in layer_params])     # (L, H, 4H)
    b2i = jnp.stack([p["b2i"].reshape(1, 4 * H) for p in layer_params])  # (L, 1, 4H)
    w1h = jnp.stack([jnp.transpose(p["w1h"]) for p in layer_params])     # (L, H, H)
    b1h = jnp.stack([p["b1h"].reshape(1, H) for p in layer_params])      # (L, 1, H)
    w2h = jnp.stack([jnp.transpose(p["w2h"]) for p in layer_params])     # (L, H, 4H)
    b2h = jnp.stack([p["b2h"].reshape(1, 4 * H) for p in layer_params])  # (L, 1, 4H)
    w3 = head_w.reshape(1, H)
    b3 = head_b.reshape(1, 1)

    n_in0 = x.shape[1]
    x_pad = jnp.pad(x, ((0, 0), (0, H - n_in0))) if n_in0 < H else x

    kernel = functools.partial(_mlrsnet_kernel, num_layers=L, hidden=H)
    vmem = pl.BlockSpec(memory_space=pltpu.MemorySpace.VMEM)

    out, hx_new, cx_new = pl.pallas_call(
        kernel,
        out_shape=(
            jax.ShapeDtypeStruct((B, 1), x.dtype),
            jax.ShapeDtypeStruct((L, B, H), x.dtype),
            jax.ShapeDtypeStruct((L, B, H), x.dtype),
        ),
        in_specs=[vmem] * 13,
        out_specs=(vmem, vmem, vmem),
    )(x_pad, hx, cx, w1i, b1i, w2i, b2i, w1h, b1h, w2h, b2h, w3, b3)
    return out, hx_new, cx_new


def _reference_forward(x, layer_params, head_w, head_b, hx, cx):
    """Pure-JAX mirror of the PyTorch MLRSNet.forward (for correctness check)."""
    H = hx.shape[-1]
    inp = x
    hs, cs = [], []
    for l, p in enumerate(layer_params):
        a = jax.nn.relu(inp @ p["w1i"].T + p["b1i"])
        i2h = a @ p["w2i"].T + p["b2i"]
        b = jax.nn.relu(hx[l] @ p["w1h"].T + p["b1h"])
        h2h = b @ p["w2h"].T + p["b2h"]
        g = i2h + h2h
        ig = jax.nn.sigmoid(g[:, :H])
        fg = jax.nn.sigmoid(g[:, H:2 * H] - 1.0)
        og = jax.nn.sigmoid(g[:, 2 * H:3 * H])
        it = jnp.tanh(g[:, 3 * H:])
        c = fg * cx[l] + ig * it
        h = og * jnp.tanh(c)
        hs.append(h)
        cs.append(c)
        inp = h
    out = jax.nn.sigmoid(inp @ head_w.T + head_b)
    return out, jnp.stack(hs), jnp.stack(cs)


if __name__ == "__main__":
    # MLRSNet(num_layers=2, hidden_size=32), batch=2, single forward step.
    num_layers, hidden, batch = 2, 32, 2

    key = jax.random.PRNGKey(0)
    keys = iter(jax.random.split(key, 32))

    def uniform(k, shape, bound):
        return jax.random.uniform(k, shape, jnp.float32, -bound, bound)

    initrange = 0.1  # MLRSNetCell.init_weights
    layer_params = []
    for l in range(num_layers):
        n_in = 1 if l == 0 else hidden
        layer_params.append({
            "w1i": uniform(next(keys), (hidden, n_in), initrange),
            "b1i": uniform(next(keys), (hidden,), 1.0 / math.sqrt(n_in)),
            "w2i": uniform(next(keys), (4 * hidden, hidden), initrange),
            "b2i": uniform(next(keys), (4 * hidden,), 1.0 / math.sqrt(hidden)),
            "w1h": uniform(next(keys), (hidden, hidden), initrange),
            "b1h": uniform(next(keys), (hidden,), 1.0 / math.sqrt(hidden)),
            "w2h": uniform(next(keys), (4 * hidden, hidden), initrange),
            "b2h": uniform(next(keys), (4 * hidden,), 1.0 / math.sqrt(hidden)),
        })
    head_w = uniform(next(keys), (1, hidden), 1.0 / math.sqrt(hidden))
    head_b = uniform(next(keys), (1,), 1.0 / math.sqrt(hidden))

    x = jax.random.normal(next(keys), (batch, 1), dtype=jnp.float32)
    # reset_lstm(): zero hidden / cell states, expanded to the batch size.
    hx = jnp.zeros((num_layers, batch, hidden), jnp.float32)
    cx = jnp.zeros((num_layers, batch, hidden), jnp.float32)

    out, hx_new, cx_new = mlrsnet_forward(x, layer_params, head_w, head_b, hx, cx)
    out = jax.block_until_ready(out)

    ref_out, ref_hx, ref_cx = _reference_forward(x, layer_params, head_w, head_b, hx, cx)
    np.testing.assert_allclose(np.asarray(out), np.asarray(ref_out), rtol=1e-5, atol=1e-5)
    np.testing.assert_allclose(np.asarray(hx_new), np.asarray(ref_hx), rtol=1e-5, atol=1e-5)
    np.testing.assert_allclose(np.asarray(cx_new), np.asarray(ref_cx), rtol=1e-5, atol=1e-5)

    print("KERNEL_OK")
</pallas_src>

<mosaic_0001>
module attributes {stable_mosaic.version = 11 : i64} {
  func.func @_mlrsnet_kernel(%arg0: memref<2x32xf32, #tpu.memory_space<vmem>>, %arg1: memref<2x2x32xf32, #tpu.memory_space<vmem>>, %arg2: memref<2x2x32xf32, #tpu.memory_space<vmem>>, %arg3: memref<2x32x32xf32, #tpu.memory_space<vmem>>, %arg4: memref<2x1x32xf32, #tpu.memory_space<vmem>>, %arg5: memref<2x32x128xf32, #tpu.memory_space<vmem>>, %arg6: memref<2x1x128xf32, #tpu.memory_space<vmem>>, %arg7: memref<2x32x32xf32, #tpu.memory_space<vmem>>, %arg8: memref<2x1x32xf32, #tpu.memory_space<vmem>>, %arg9: memref<2x32x128xf32, #tpu.memory_space<vmem>>, %arg10: memref<2x1x128xf32, #tpu.memory_space<vmem>>, %arg11: memref<1x32xf32, #tpu.memory_space<vmem>>, %arg12: memref<1x1xf32, #tpu.memory_space<vmem>>, %arg13: memref<2x1xf32, #tpu.memory_space<vmem>>, %arg14: memref<2x2x32xf32, #tpu.memory_space<vmem>>, %arg15: memref<2x2x32xf32, #tpu.memory_space<vmem>>) attributes {dimension_semantics = [], scalar_prefetch = 0 : i64, scratch_operands = 0 : i64, tpu.core_type = #tpu.core_type<tc>} {
    %c0 = arith.constant 0 : index
    %c0_0 = arith.constant 0 : index
    %0 = vector.load %arg0[%c0, %c0_0] : memref<2x32xf32, #tpu.memory_space<vmem>>, vector<2x32xf32>
    %c0_1 = arith.constant 0 : index
    %c0_2 = arith.constant 0 : index
    %c0_3 = arith.constant 0 : index
    %1 = vector.load %arg3[%c0_1, %c0_2, %c0_3] : memref<2x32x32xf32, #tpu.memory_space<vmem>>, vector<1x32x32xf32>
    %2 = vector.shape_cast %1 : vector<1x32x32xf32> to vector<32x32xf32>
    %cst = arith.constant dense<0.000000e+00> : vector<2x32xf32>
    %3 = tpu.matmul %0, %2, %cst {dimension_numbers = #tpu.dot_dimension_numbers<[1], [0], [0], [1], [0, 0, 1, 1], [], []>} : vector<2x32xf32>, vector<32x32xf32>, vector<2x32xf32> -> vector<2x32xf32>
    %c0_4 = arith.constant 0 : index
    %c0_5 = arith.constant 0 : index
    %c0_6 = arith.constant 0 : index
    %4 = vector.load %arg4[%c0_4, %c0_5, %c0_6] : memref<2x1x32xf32, #tpu.memory_space<vmem>>, vector<1x1x32xf32>
    %5 = vector.shape_cast %4 : vector<1x1x32xf32> to vector<1x32xf32>
    %6 = vector.broadcast %5 : vector<1x32xf32> to vector<2x32xf32>
    %7 = arith.addf %3, %6 : vector<2x32xf32>
    %cst_7 = arith.constant 0.000000e+00 : f32
    %8 = vector.broadcast %cst_7 : f32 to vector<2x32xf32>
    %9 = arith.maximumf %7, %8 : vector<2x32xf32>
    %c0_8 = arith.constant 0 : index
    %c0_9 = arith.constant 0 : index
    %c0_10 = arith.constant 0 : index
    %10 = vector.load %arg5[%c0_8, %c0_9, %c0_10] : memref<2x32x128xf32, #tpu.memory_space<vmem>>, vector<1x32x128xf32>
    %11 = vector.shape_cast %10 : vector<1x32x128xf32> to vector<32x128xf32>
    %cst_11 = arith.constant dense<0.000000e+00> : vector<2x128xf32>
    %12 = tpu.matmul %9, %11, %cst_11 {dimension_numbers = #tpu.dot_dimension_numbers<[1], [0], [0], [1], [0, 0, 1, 1], [], []>} : vector<2x32xf32>, vector<32x128xf32>, vector<2x128xf32> -> vector<2x128xf32>
    %c0_12 = arith.constant 0 : index
    %c0_13 = arith.constant 0 : index
    %c0_14 = arith.constant 0 : index
    %13 = vector.load %arg6[%c0_12, %c0_13, %c0_14] : memref<2x1x128xf32, #tpu.memory_space<vmem>>, vector<1x1x128xf32>
    %14 = vector.shape_cast %13 : vector<1x1x128xf32> to vector<1x128xf32>
    %15 = vector.broadcast %14 : vector<1x128xf32> to vector<2x128xf32>
    %16 = arith.addf %12, %15 : vector<2x128xf32>
    %c0_15 = arith.constant 0 : index
    %c0_16 = arith.constant 0 : index
    %c0_17 = arith.constant 0 : index
    %17 = vector.load %arg1[%c0_15, %c0_16, %c0_17] : memref<2x2x32xf32, #tpu.memory_space<vmem>>, vector<1x2x32xf32>
    %18 = vector.shape_cast %17 : vector<1x2x32xf32> to vector<2x32xf32>
    %c0_18 = arith.constant 0 : index
    %c0_19 = arith.constant 0 : index
    %c0_20 = arith.constant 0 : index
    %19 = vector.load %arg7[%c0_18, %c0_19, %c0_20] : memref<2x32x32xf32, #tpu.memory_space<vmem>>, vector<1x32x32xf32>
    %20 = vector.shape_cast %19 : vector<1x32x32xf32> to vector<32x32xf32>
    %cst_21 = arith.constant dense<0.000000e+00> : vector<2x32xf32>
    %21 = tpu.matmul %18, %20, %cst_21 {dimension_numbers = #tpu.dot_dimension_numbers<[1], [0], [0], [1], [0, 0, 1, 1], [], []>} : vector<2x32xf32>, vector<32x32xf32>, vector<2x32xf32> -> vector<2x32xf32>
    %c0_22 = arith.constant 0 : index
    %c0_23 = arith.constant 0 : index
    %c0_24 = arith.constant 0 : index
    %22 = vector.load %arg8[%c0_22, %c0_23, %c0_24] : memref<2x1x32xf32, #tpu.memory_space<vmem>>, vector<1x1x32xf32>
    %23 = vector.shape_cast %22 : vector<1x1x32xf32> to vector<1x32xf32>
    %24 = vector.broadcast %23 : vector<1x32xf32> to vector<2x32xf32>
    %25 = arith.addf %21, %24 : vector<2x32xf32>
    %cst_25 = arith.constant 0.000000e+00 : f32
    %26 = vector.broadcast %cst_25 : f32 to vector<2x32xf32>
    %27 = arith.maximumf %25, %26 : vector<2x32xf32>
    %c0_26 = arith.constant 0 : index
    %c0_27 = arith.constant 0 : index
    %c0_28 = arith.constant 0 : index
    %28 = vector.load %arg9[%c0_26, %c0_27, %c0_28] : memref<2x32x128xf32, #tpu.memory_space<vmem>>, vector<1x32x128xf32>
    %29 = vector.shape_cast %28 : vector<1x32x128xf32> to vector<32x128xf32>
    %cst_29 = arith.constant dense<0.000000e+00> : vector<2x128xf32>
    %30 = tpu.matmul %27, %29, %cst_29 {dimension_numbers = #tpu.dot_dimension_numbers<[1], [0], [0], [1], [0, 0, 1, 1], [], []>} : vector<2x32xf32>, vector<32x128xf32>, vector<2x128xf32> -> vector<2x128xf32>
    %c0_30 = arith.constant 0 : index
    %c0_31 = arith.constant 0 : index
    %c0_32 = arith.constant 0 : index
    %31 = vector.load %arg10[%c0_30, %c0_31, %c0_32] : memref<2x1x128xf32, #tpu.memory_space<vmem>>, vector<1x1x128xf32>
    %32 = vector.shape_cast %31 : vector<1x1x128xf32> to vector<1x128xf32>
    %33 = vector.broadcast %32 : vector<1x128xf32> to vector<2x128xf32>
    %34 = arith.addf %30, %33 : vector<2x128xf32>
    %35 = arith.addf %16, %34 : vector<2x128xf32>
    %36 = vector.extract_strided_slice %35 {offsets = [0, 0], sizes = [2, 32], strides = [1, 1]} : vector<2x128xf32> to vector<2x32xf32>
    %cst_33 = arith.constant 0.000000e+00 : f32
    %37 = vector.broadcast %cst_33 : f32 to vector<2x32xf32>
    %38 = arith.subf %37, %36 : vector<2x32xf32>
    %39 = math.exp %38 : vector<2x32xf32>
    %cst_34 = arith.constant 1.000000e+00 : f32
    %40 = vector.broadcast %cst_34 : f32 to vector<2x32xf32>
    %41 = arith.addf %40, %39 : vector<2x32xf32>
    %cst_35 = arith.constant 1.000000e+00 : f32
    %42 = vector.broadcast %cst_35 : f32 to vector<2x32xf32>
    %43 = arith.divf %42, %41 : vector<2x32xf32>
    %44 = vector.extract_strided_slice %35 {offsets = [0, 32], sizes = [2, 32], strides = [1, 1]} : vector<2x128xf32> to vector<2x32xf32>
    %cst_36 = arith.constant 1.000000e+00 : f32
    %45 = vector.broadcast %cst_36 : f32 to vector<2x32xf32>
    %46 = arith.subf %44, %45 : vector<2x32xf32>
    %cst_37 = arith.constant 0.000000e+00 : f32
    %47 = vector.broadcast %cst_37 : f32 to vector<2x32xf32>
    %48 = arith.subf %47, %46 : vector<2x32xf32>
    %49 = math.exp %48 : vector<2x32xf32>
    %cst_38 = arith.constant 1.000000e+00 : f32
    %50 = vector.broadcast %cst_38 : f32 to vector<2x32xf32>
    %51 = arith.addf %50, %49 : vector<2x32xf32>
    %cst_39 = arith.constant 1.000000e+00 : f32
    %52 = vector.broadcast %cst_39 : f32 to vector<2x32xf32>
    %53 = arith.divf %52, %51 : vector<2x32xf32>
    %54 = vector.extract_strided_slice %35 {offsets = [0, 64], sizes = [2, 32], strides = [1, 1]} : vector<2x128xf32> to vector<2x32xf32>
    %cst_40 = arith.constant 0.000000e+00 : f32
    %55 = vector.broadcast %cst_40 : f32 to vector<2x32xf32>
    %56 = arith.subf %55, %54 : vector<2x32xf32>
    %57 = math.exp %56 : vector<2x32xf32>
    %cst_41 = arith.constant 1.000000e+00 : f32
    %58 = vector.broadcast %cst_41 : f32 to vector<2x32xf32>
    %59 = arith.addf %58, %57 : vector<2x32xf32>
    %cst_42 = arith.constant 1.000000e+00 : f32
    %60 = vector.broadcast %cst_42 : f32 to vector<2x32xf32>
    %61 = arith.divf %60, %59 : vector<2x32xf32>
    %62 = vector.extract_strided_slice %35 {offsets = [0, 96], sizes = [2, 32], strides = [1, 1]} : vector<2x128xf32> to vector<2x32xf32>
    %63 = math.tanh %62 : vector<2x32xf32>
    %c0_43 = arith.constant 0 : index
    %c0_44 = arith.constant 0 : index
    %c0_45 = arith.constant 0 : index
    %64 = vector.load %arg2[%c0_43, %c0_44, %c0_45] : memref<2x2x32xf32, #tpu.memory_space<vmem>>, vector<1x2x32xf32>
    %65 = vector.shape_cast %64 : vector<1x2x32xf32> to vector<2x32xf32>
    %66 = arith.mulf %53, %65 : vector<2x32xf32>
    %67 = arith.mulf %43, %63 : vector<2x32xf32>
    %68 = arith.addf %66, %67 : vector<2x32xf32>
    %69 = math.tanh %68 : vector<2x32xf32>
    %70 = arith.mulf %61, %69 : vector<2x32xf32>
    %c0_46 = arith.constant 0 : index
    %c0_47 = arith.constant 0 : index
    %c0_48 = arith.constant 0 : index
    %71 = vector.load %arg14[%c0_46, %c0_47, %c0_48] : memref<2x2x32xf32, #tpu.memory_space<vmem>>, vector<1x2x32xf32>
    %72 = vector.shape_cast %71 : vector<1x2x32xf32> to vector<2x32xf32>
    %73 = vector.shape_cast %70 : vector<2x32xf32> to vector<1x2x32xf32>
    tpu.vector_store %arg14[%c0_46, %c0_47, %c0_48], %73 {strides = array<i32>} : memref<2x2x32xf32, #tpu.memory_space<vmem>>, vector<1x2x32xf32>,
    %c0_49 = arith.constant 0 : index
    %c0_50 = arith.constant 0 : index
    %c0_51 = arith.constant 0 : index
    %74 = vector.load %arg15[%c0_49, %c0_50, %c0_51] : memref<2x2x32xf32, #tpu.memory_space<vmem>>, vector<1x2x32xf32>
    %75 = vector.shape_cast %74 : vector<1x2x32xf32> to vector<2x32xf32>
    %76 = vector.shape_cast %68 : vector<2x32xf32> to vector<1x2x32xf32>
    tpu.vector_store %arg15[%c0_49, %c0_50, %c0_51], %76 {strides = array<i32>} : memref<2x2x32xf32, #tpu.memory_space<vmem>>, vector<1x2x32xf32>,
    %c1 = arith.constant 1 : index
    %c0_52 = arith.constant 0 : index
    %c0_53 = arith.constant 0 : index
    %77 = vector.load %arg3[%c1, %c0_52, %c0_53] : memref<2x32x32xf32, #tpu.memory_space<vmem>>, vector<1x32x32xf32>
    %78 = vector.shape_cast %77 : vector<1x32x32xf32> to vector<32x32xf32>
    %cst_54 = arith.constant dense<0.000000e+00> : vector<2x32xf32>
    %79 = tpu.matmul %70, %78, %cst_54 {dimension_numbers = #tpu.dot_dimension_numbers<[1], [0], [0], [1], [0, 0, 1, 1], [], []>} : vector<2x32xf32>, vector<32x32xf32>, vector<2x32xf32> -> vector<2x32xf32>
    %c1_55 = arith.constant 1 : index
    %c0_56 = arith.constant 0 : index
    %c0_57 = arith.constant 0 : index
    %80 = vector.load %arg4[%c1_55, %c0_56, %c0_57] : memref<2x1x32xf32, #tpu.memory_space<vmem>>, vector<1x1x32xf32>
    %81 = vector.shape_cast %80 : vector<1x1x32xf32> to vector<1x32xf32>
    %82 = vector.broadcast %81 : vector<1x32xf32> to vector<2x32xf32>
    %83 = arith.addf %79, %82 : vector<2x32xf32>
    %cst_58 = arith.constant 0.000000e+00 : f32
    %84 = vector.broadcast %cst_58 : f32 to vector<2x32xf32>
    %85 = arith.maximumf %83, %84 : vector<2x32xf32>
    %c1_59 = arith.constant 1 : index
    %c0_60 = arith.constant 0 : index
    %c0_61 = arith.constant 0 : index
    %86 = vector.load %arg5[%c1_59, %c0_60, %c0_61] : memref<2x32x128xf32, #tpu.memory_space<vmem>>, vector<1x32x128xf32>
    %87 = vector.shape_cast %86 : vector<1x32x128xf32> to vector<32x128xf32>
    %cst_62 = arith.constant dense<0.000000e+00> : vector<2x128xf32>
    %88 = tpu.matmul %85, %87, %cst_62 {dimension_numbers = #tpu.dot_dimension_numbers<[1], [0], [0], [1], [0, 0, 1, 1], [], []>} : vector<2x32xf32>, vector<32x128xf32>, vector<2x128xf32> -> vector<2x128xf32>
    %c1_63 = arith.constant 1 : index
    %c0_64 = arith.constant 0 : index
    %c0_65 = arith.constant 0 : index
    %89 = vector.load %arg6[%c1_63, %c0_64, %c0_65] : memref<2x1x128xf32, #tpu.memory_space<vmem>>, vector<1x1x128xf32>
    %90 = vector.shape_cast %89 : vector<1x1x128xf32> to vector<1x128xf32>
    %91 = vector.broadcast %90 : vector<1x128xf32> to vector<2x128xf32>
    %92 = arith.addf %88, %91 : vector<2x128xf32>
    %c1_66 = arith.constant 1 : index
    %c0_67 = arith.constant 0 : index
    %c0_68 = arith.constant 0 : index
    %93 = vector.load %arg1[%c1_66, %c0_67, %c0_68] : memref<2x2x32xf32, #tpu.memory_space<vmem>>, vector<1x2x32xf32>
    %94 = vector.shape_cast %93 : vector<1x2x32xf32> to vector<2x32xf32>
    %c1_69 = arith.constant 1 : index
    %c0_70 = arith.constant 0 : index
    %c0_71 = arith.constant 0 : index
    %95 = vector.load %arg7[%c1_69, %c0_70, %c0_71] : memref<2x32x32xf32, #tpu.memory_space<vmem>>, vector<1x32x32xf32>
    %96 = vector.shape_cast %95 : vector<1x32x32xf32> to vector<32x32xf32>
    %cst_72 = arith.constant dense<0.000000e+00> : vector<2x32xf32>
    %97 = tpu.matmul %94, %96, %cst_72 {dimension_numbers = #tpu.dot_dimension_numbers<[1], [0], [0], [1], [0, 0, 1, 1], [], []>} : vector<2x32xf32>, vector<32x32xf32>, vector<2x32xf32> -> vector<2x32xf32>
    %c1_73 = arith.constant 1 : index
    %c0_74 = arith.constant 0 : index
    %c0_75 = arith.constant 0 : index
    %98 = vector.load %arg8[%c1_73, %c0_74, %c0_75] : memref<2x1x32xf32, #tpu.memory_space<vmem>>, vector<1x1x32xf32>
    %99 = vector.shape_cast %98 : vector<1x1x32xf32> to vector<1x32xf32>
    %100 = vector.broadcast %99 : vector<1x32xf32> to vector<2x32xf32>
    %101 = arith.addf %97, %100 : vector<2x32xf32>
    %cst_76 = arith.constant 0.000000e+00 : f32
    %102 = vector.broadcast %cst_76 : f32 to vector<2x32xf32>
    %103 = arith.maximumf %101, %102 : vector<2x32xf32>
    %c1_77 = arith.constant 1 : index
    %c0_78 = arith.constant 0 : index
    %c0_79 = arith.constant 0 : index
    %104 = vector.load %arg9[%c1_77, %c0_78, %c0_79] : memref<2x32x128xf32, #tpu.memory_space<vmem>>, vector<1x32x128xf32>
    %105 = vector.shape_cast %104 : vector<1x32x128xf32> to vector<32x128xf32>
    %cst_80 = arith.constant dense<0.000000e+00> : vector<2x128xf32>
    %106 = tpu.matmul %103, %105, %cst_80 {dimension_numbers = #tpu.dot_dimension_numbers<[1], [0], [0], [1], [0, 0, 1, 1], [], []>} : vector<2x32xf32>, vector<32x128xf32>, vector<2x128xf32> -> vector<2x128xf32>
    %c1_81 = arith.constant 1 : index
    %c0_82 = arith.constant 0 : index
    %c0_83 = arith.constant 0 : index
    %107 = vector.load %arg10[%c1_81, %c0_82, %c0_83] : memref<2x1x128xf32, #tpu.memory_space<vmem>>, vector<1x1x128xf32>
    %108 = vector.shape_cast %107 : vector<1x1x128xf32> to vector<1x128xf32>
    %109 = vector.broadcast %108 : vector<1x128xf32> to vector<2x128xf32>
    %110 = arith.addf %106, %109 : vector<2x128xf32>
    %111 = arith.addf %92, %110 : vector<2x128xf32>
    %112 = vector.extract_strided_slice %111 {offsets = [0, 0], sizes = [2, 32], strides = [1, 1]} : vector<2x128xf32> to vector<2x32xf32>
    %cst_84 = arith.constant 0.000000e+00 : f32
    %113 = vector.broadcast %cst_84 : f32 to vector<2x32xf32>
    %114 = arith.subf %113, %112 : vector<2x32xf32>
    %115 = math.exp %114 : vector<2x32xf32>
    %cst_85 = arith.constant 1.000000e+00 : f32
    %116 = vector.broadcast %cst_85 : f32 to vector<2x32xf32>
    %117 = arith.addf %116, %115 : vector<2x32xf32>
    %cst_86 = arith.constant 1.000000e+00 : f32
    %118 = vector.broadcast %cst_86 : f32 to vector<2x32xf32>
    %119 = arith.divf %118, %117 : vector<2x32xf32>
    %120 = vector.extract_strided_slice %111 {offsets = [0, 32], sizes = [2, 32], strides = [1, 1]} : vector<2x128xf32> to vector<2x32xf32>
    %cst_87 = arith.constant 1.000000e+00 : f32
    %121 = vector.broadcast %cst_87 : f32 to vector<2x32xf32>
    %122 = arith.subf %120, %121 : vector<2x32xf32>
    %cst_88 = arith.constant 0.000000e+00 : f32
    %123 = vector.broadcast %cst_88 : f32 to vector<2x32xf32>
    %124 = arith.subf %123, %122 : vector<2x32xf32>
    %125 = math.exp %124 : vector<2x32xf32>
    %cst_89 = arith.constant 1.000000e+00 : f32
    %126 = vector.broadcast %cst_89 : f32 to vector<2x32xf32>
    %127 = arith.addf %126, %125 : vector<2x32xf32>
    %cst_90 = arith.constant 1.000000e+00 : f32
    %128 = vector.broadcast %cst_90 : f32 to vector<2x32xf32>
    %129 = arith.divf %128, %127 : vector<2x32xf32>
    %130 = vector.extract_strided_slice %111 {offsets = [0, 64], sizes = [2, 32], strides = [1, 1]} : vector<2x128xf32> to vector<2x32xf32>
    %cst_91 = arith.constant 0.000000e+00 : f32
    %131 = vector.broadcast %cst_91 : f32 to vector<2x32xf32>
    %132 = arith.subf %131, %130 : vector<2x32xf32>
    %133 = math.exp %132 : vector<2x32xf32>
    %cst_92 = arith.constant 1.000000e+00 : f32
    %134 = vector.broadcast %cst_92 : f32 to vector<2x32xf32>
    %135 = arith.addf %134, %133 : vector<2x32xf32>
    %cst_93 = arith.constant 1.000000e+00 : f32
    %136 = vector.broadcast %cst_93 : f32 to vector<2x32xf32>
    %137 = arith.divf %136, %135 : vector<2x32xf32>
    %138 = vector.extract_strided_slice %111 {offsets = [0, 96], sizes = [2, 32], strides = [1, 1]} : vector<2x128xf32> to vector<2x32xf32>
    %139 = math.tanh %138 : vector<2x32xf32>
    %c1_94 = arith.constant 1 : index
    %c0_95 = arith.constant 0 : index
    %c0_96 = arith.constant 0 : index
    %140 = vector.load %arg2[%c1_94, %c0_95, %c0_96] : memref<2x2x32xf32, #tpu.memory_space<vmem>>, vector<1x2x32xf32>
    %141 = vector.shape_cast %140 : vector<1x2x32xf32> to vector<2x32xf32>
    %142 = arith.mulf %129, %141 : vector<2x32xf32>
    %143 = arith.mulf %119, %139 : vector<2x32xf32>
    %144 = arith.addf %142, %143 : vector<2x32xf32>
    %145 = math.tanh %144 : vector<2x32xf32>
    %146 = arith.mulf %137, %145 : vector<2x32xf32>
    %c1_97 = arith.constant 1 : index
    %c0_98 = arith.constant 0 : index
    %c0_99 = arith.constant 0 : index
    %147 = vector.load %arg14[%c1_97, %c0_98, %c0_99] : memref<2x2x32xf32, #tpu.memory_space<vmem>>, vector<1x2x32xf32>
    %148 = vector.shape_cast %147 : vector<1x2x32xf32> to vector<2x32xf32>
    %149 = vector.shape_cast %146 : vector<2x32xf32> to vector<1x2x32xf32>
    tpu.vector_store %arg14[%c1_97, %c0_98, %c0_99], %149 {strides = array<i32>} : memref<2x2x32xf32, #tpu.memory_space<vmem>>, vector<1x2x32xf32>,
    %c1_100 = arith.constant 1 : index
    %c0_101 = arith.constant 0 : index
    %c0_102 = arith.constant 0 : index
    %150 = vector.load %arg15[%c1_100, %c0_101, %c0_102] : memref<2x2x32xf32, #tpu.memory_space<vmem>>, vector<1x2x32xf32>
    %151 = vector.shape_cast %150 : vector<1x2x32xf32> to vector<2x32xf32>
    %152 = vector.shape_cast %144 : vector<2x32xf32> to vector<1x2x32xf32>
    tpu.vector_store %arg15[%c1_100, %c0_101, %c0_102], %152 {strides = array<i32>} : memref<2x2x32xf32, #tpu.memory_space<vmem>>, vector<1x2x32xf32>,
    %c0_103 = arith.constant 0 : index
    %c0_104 = arith.constant 0 : index
    %153 = vector.load %arg11[%c0_103, %c0_104] : memref<1x32xf32, #tpu.memory_space<vmem>>, vector<1x32xf32>
    %154 = vector.broadcast %153 : vector<1x32xf32> to vector<2x32xf32>
    %155 = arith.mulf %146, %154 : vector<2x32xf32>
    %cst_105 = arith.constant dense<0.000000e+00> : vector<2xf32>
    %156 = vector.multi_reduction <add>, %155, %cst_105 [1] : vector<2x32xf32> to vector<2xf32>
    %157 = vector.shape_cast %156 : vector<2xf32> to vector<2x1xf32>
    %c0_106 = arith.constant 0 : index
    %c0_107 = arith.constant 0 : index
    %158 = vector.load %arg12[%c0_106, %c0_107] : memref<1x1xf32, #tpu.memory_space<vmem>>, vector<1x1xf32>
    %159 = vector.broadcast %158 : vector<1x1xf32> to vector<2x1xf32>
    %160 = arith.addf %157, %159 : vector<2x1xf32>
    %cst_108 = arith.constant 0.000000e+00 : f32
    %161 = vector.broadcast %cst_108 : f32 to vector<2x1xf32>
    %162 = arith.subf %161, %160 : vector<2x1xf32>
    %163 = math.exp %162 : vector<2x1xf32>
    %cst_109 = arith.constant 1.000000e+00 : f32
    %164 = vector.broadcast %cst_109 : f32 to vector<2x1xf32>
    %165 = arith.addf %164, %163 : vector<2x1xf32>
    %cst_110 = arith.constant 1.000000e+00 : f32
    %166 = vector.broadcast %cst_110 : f32 to vector<2x1xf32>
    %167 = arith.divf %166, %165 : vector<2x1xf32>
    %c0_111 = arith.constant 0 : index
    %c0_112 = arith.constant 0 : index
    %168 = vector.load %arg13[%c0_111, %c0_112] : memref<2x1xf32, #tpu.memory_space<vmem>>, vector<2x1xf32>
    tpu.vector_store %arg13[%c0_111, %c0_112], %167 {strides = array<i32>} : memref<2x1xf32, #tpu.memory_space<vmem>>, vector<2x1xf32>,
    return
  }
}

</mosaic_0001>

<bundles_post_ra>
// kernel: tpu_custom_call.1
= control target key start
LH: loop header
LB: loop body
LE: loop exit
PB: predicated region body
PF: predicated region fallthrough
CT: control target
= control target key end

     0   :  { %s1616_s0 = inlined_call_operand.hbm [shape: f32[2,32], index: 0, kind: input, shape index: {}]   ;;  %s1617_s1 = inlined_call_operand.hbm [shape: f32[2,2,32], index: 1, kind: input, shape index: {}]   ;;  %s1618_s2 = inlined_call_operand.vmem [shape: f32[2,2,32], index: 2, kind: input, shape index: {}]   ;;  %s1619_s3 = inlined_call_operand.hbm [shape: f32[2,32,32], index: 3, kind: input, shape index: {}]   ;;  %s1620_s4 = inlined_call_operand.vmem [shape: f32[2,1,32], index: 4, kind: input, shape index: {}]   ;;  %s1621_s5 = inlined_call_operand.hbm [shape: f32[2,32,128], index: 5, kind: input, shape index: {}]   ;;  %s1622_s6 = inlined_call_operand.vmem [shape: f32[2,1,128], index: 6, kind: input, shape index: {}]   ;;  %s1623_s7 = inlined_call_operand.hbm [shape: f32[2,32,32], index: 7, kind: input, shape index: {}]   ;;  %s1624_s8 = inlined_call_operand.vmem [shape: f32[2,1,32], index: 8, kind: input, shape index: {}]   ;;  %s1625_s9 = inlined_call_operand.hbm [shape: f32[2,32,128], index: 9, kind: input, shape index: {}]   ;;  %s1626_s10 = inlined_call_operand.vmem [shape: f32[2,1,128], index: 10, kind: input, shape index: {}]   ;;  %s1627_s11 = inlined_call_operand.vmem [shape: f32[1,32], index: 11, kind: input, shape index: {}]   ;;  %s1628_s12 = inlined_call_operand.<no memory space> [shape: f32[1,1], index: 12, kind: input, shape index: {}]   ;;  %s1629_s13 = inlined_call_operand.vmem [shape: f32[2,1], index: 13, kind: output, shape index: {0}]   ;;  %s1630_s14 = inlined_call_operand.hbm [shape: f32[2,2,32], index: 14, kind: output, shape index: {1}]   ;;  %s1631_s15 = inlined_call_operand.hbm [shape: f32[2,2,32], index: 15, kind: output, shape index: {2}]  }
   0x1   :  { %v21_v0 = vstv %s1628_s12 }
   0x2   :  { %22 = vst [vmem:[#allocation2] sm:$0x1] %v21_v0 }
   0x3   :  { %23 = vsyncpa [#allocation4], 0 }
   0x4   :  { %24 = vsyncpa [#allocation7], 0 }
   0x5   :  { %25 = vsyncpa [#allocation10], 0 }
   0x6   :  { %26 = vsyncpa [#allocation13], 0 }
   0x7   :  { %27 = vsyncpa [#allocation5], 0 }
   0x8   :  { %28 = vsyncpa [#allocation16], 0  ;;  %s1359_s20 = smov [#allocation6]  }
   0x9   :  { %s44_s21 = sshll.u32 %s1359_s20, 4  ;;  %s45_s21 = int_to_ptr.vmem [resolvable:$true] %s44_s21 }
   0xa   :  { %s1195_s22 = scalar_lea.vmem %s45_s21, 64  ;;  %p1200_p1 = scmp.lt.s32.totalorder %s45_s21, %s45_s21 }
   0xb   :  { %p1196_p0 = scmp.ne.s32.totalorder %s45_s21, %s1195_s22  ;;  %p1201_p2 = scmp.lt.s32.totalorder %s1195_s22, %s1195_s22 }
   0xd   :  { %p1202_p3 = por %p1201_p2, %p1200_p1 }
   0xf   :  { %p1203_p4 = pnand %p1202_p3, %p1196_p0 }
  0x11   :  { %1206 = shalt.err (!%p1203_p4)
}
  0x12   :  { %s1360_s23 = smov 32   ;;  %s1361_s24 = smov 2  }
  0x13   :  { %50 = dma.hbm_to_vmem [thread:$0]  %s1617_s1, 64, %s45_s21, [#allocation7], %s1360_s23, %s1360_s23, %s1361_s24  }
  0x14   :  { %s1362_s26 = smov [#allocation9]   ;;  %s1363_s28 = smov [#allocation3]  }
  0x15   :  { %s72_s27 = sshll.u32 %s1362_s26, 4  ;;  %s35_s29 = sshll.u32 %s1363_s28, 4  ;;  %s73_s27 = int_to_ptr.vmem [resolvable:$true] %s72_s27  ;;  %s36_s29 = int_to_ptr.vmem [resolvable:$true] %s35_s29 }
  0x16   :  { %s1215_s30 = scalar_lea.vmem %s73_s27, 1024  ;;  %p1220_p6 = scmp.lt.s32.totalorder %s73_s27, %s73_s27 }
  0x17   :  { %p1216_p5 = scmp.ne.s32.totalorder %s73_s27, %s1215_s30  ;;  %p1221_p7 = scmp.lt.s32.totalorder %s1215_s30, %s1215_s30 }
  0x19   :  { %p1222_p8 = por %p1221_p7, %p1220_p6 }
  0x1b   :  { %p1223_p9 = pnand %p1222_p8, %p1216_p5 }
  0x1d   :  { %1226 = shalt.err (!%p1223_p9)
}
  0x1e   :  { %s1364_s16 = smov 128   ;;  %s1365_s17 = smov 8  }
  0x1f   :  { %78 = dma.hbm_to_vmem [thread:$0]  %s1621_s5, 1024, %s73_s27, [#allocation10], %s1364_s16, %s1364_s16, %s1365_s17  }
  0x20   :  { %s1235_s1 = scalar_lea.vmem %s36_s29, 32  ;;  %p1240_p11 = scmp.lt.s32.totalorder %s36_s29, %s36_s29 }
  0x21   :  { %p1236_p10 = scmp.ne.s32.totalorder %s36_s29, %s1235_s1  ;;  %p1241_p12 = scmp.lt.s32.totalorder %s1235_s1, %s1235_s1 }
  0x23   :  { %p1242_p13 = por %p1241_p12, %p1240_p11 }
  0x25   :  { %p1243_p0 = pnand %p1242_p13, %p1236_p10 }
  0x27   :  { %1246 = shalt.err (!%p1243_p0)
}
  0x28   :  { %38 = dma.hbm_to_vmem [thread:$0]  %s1616_s0, 32, %s36_s29, [#allocation4]  }
  0x29   :  { %s1366_s22 = smov [#allocation8]   ;;  %s1367_s25 = smov [#allocation11]  }
  0x2a   :  { %s58_s12 = sshll.u32 %s1366_s22, 4  ;;  %s86_s26 = sshll.u32 %s1367_s25, 4  ;;  %s59_s12 = int_to_ptr.vmem [resolvable:$true] %s58_s12  ;;  %s87_s26 = int_to_ptr.vmem [resolvable:$true] %s86_s26 }
  0x2b   :  { %s1255_s28 = scalar_lea.vmem %s59_s12, 1024  ;;  %p1260_p2 = scmp.lt.s32.totalorder %s59_s12, %s59_s12 }
  0x2c   :  { %p1256_p1 = scmp.ne.s32.totalorder %s59_s12, %s1255_s28  ;;  %p1261_p3 = scmp.lt.s32.totalorder %s1255_s28, %s1255_s28 }
  0x2e   :  { %p1262_p4 = por %p1261_p3, %p1260_p2 }
  0x30   :  { %p1263_p5 = pnand %p1262_p4, %p1256_p1 }
  0x32   :  { %1266 = shalt.err (!%p1263_p5)
}
  0x33   :  { %64 = dma.hbm_to_vmem [thread:$0]  %s1619_s3, 1024, %s59_s12, [#allocation7], %s1364_s16, %s1364_s16, %s1365_s17  }
  0x34   :  { %s1275_s0 = scalar_lea.vmem %s87_s26, 1024  ;;  %p1280_p7 = scmp.lt.s32.totalorder %s87_s26, %s87_s26 }
  0x35   :  { %p1276_p6 = scmp.ne.s32.totalorder %s87_s26, %s1275_s0  ;;  %p1281_p8 = scmp.lt.s32.totalorder %s1275_s0, %s1275_s0 }
  0x37   :  { %p1282_p9 = por %p1281_p8, %p1280_p7 }
  0x39   :  { %p1283_p10 = pnand %p1282_p9, %p1276_p6 }
  0x3b   :  { %1286 = shalt.err (!%p1283_p10)
}
  0x3c   :  { %92 = dma.hbm_to_vmem [thread:$0]  %s1623_s7, 1024, %s87_s26, [#allocation10], %s1364_s16, %s1364_s16, %s1365_s17  }
  0x3d   :  { %s1368_s18 = smov [#allocation12]  }
  0x3e   :  { %s100_s19 = sshll.u32 %s1368_s18, 4  ;;  %s101_s19 = int_to_ptr.vmem [resolvable:$true] %s100_s19 }
  0x3f   :  { %s1295_s1 = scalar_lea.vmem %s101_s19, 1024  ;;  %p1300_p12 = scmp.lt.s32.totalorder %s101_s19, %s101_s19 }
  0x40   :  { %p1296_p11 = scmp.ne.s32.totalorder %s101_s19, %s1295_s1  ;;  %p1301_p13 = scmp.lt.s32.totalorder %s1295_s1, %s1295_s1 }
  0x42   :  { %p1302_p0 = por %p1301_p13, %p1300_p12 }
  0x44   :  { %p1303_p1 = pnand %p1302_p0, %p1296_p11 }
  0x46   :  { %1306 = shalt.err (!%p1303_p1)
}
  0x47   :  { %106 = dma.hbm_to_vmem [thread:$0]  %s1625_s9, 1024, %s101_s19, [#allocation13], %s1364_s16, %s1364_s16, %s1365_s17  }
  0x48   :  { %1347 = dma.done.wait [#allocation4], 32  }
  0x49   :  { %1348 = vsyncadd [#allocation4], 4294967264 }
  0x4a   :  { %1349 = dma.done.wait [#allocation7], 1088  }
  0x4b   :  { %1350 = vsyncadd [#allocation7], 4294966208 }
  0x4c   :  { %1351 = dma.done.wait [#allocation10], 2048  }
  0x4d   :  { %1352 = vsyncadd [#allocation10], 4294965248 }
  0x4e   :  { %1353 = dma.done.wait [#allocation13], 1024  }
  0x4f   :  { %1354 = vsyncadd [#allocation13], 4294966272  ;;  %v1369_v1 = vmov 0.0   ;;  %vm1370_vm0 = vmmov 0   ;;  %v135_v2 = vld [vmem:[#allocation8 + $0x18] sm:$0xff]  ;;  %v134_v3 = vld [vmem:[#allocation8 + $0x10] sm:$0xff] }
  0x50   :  { %1055 = vmatprep.subr.mxu0 %v1369_v1  ;;  %1063 = vmatprep.mubr.msk.f32.mxu0 %vm1370_vm0, %v1369_v1  ;;  %v133_v4 = vld [vmem:[#allocation8 + $0x8] sm:$0xff]  ;;  %v221_v5 = vld [vmem:[#allocation9 + $0x18] sm:$0xff]  ;;  %v132_v6 = vld [vmem:[#allocation8] sm:$0xff]  ;;  %vm143_vm1 = vcmask 261120   ;;  %s1371_s5 = smov 64   ;;  %vm513_vm2 = vcmask 254976  }
  0x51   :  { %1066 = vmatprep.subr.mxu1 %v1369_v1  ;;  %1074 = vmatprep.mubr.msk.f32.mxu1 %vm1370_vm0, %v1369_v1  ;;  %v131_v7 = vld [vmem:[#allocation3] sm:$0x3]  ;;  %v305_v9 = vld [vmem:[#allocation11 + $0x10] sm:$0xff]  ;;  %v304_v10 = vld [vmem:[#allocation11 + $0x8] sm:$0xff]  ;;  %s1373_s3 = smov [#allocation14]   ;;  %s1374_s7 = smov [#allocation15]  }
  0x52   :  { %1056 = vmatpush3.msra.mxu0 %v135_v2  ;;  %1067 = vmatpush3.msra.mxu1 %v221_v5  ;;  %v306_v8 = vld [vmem:[#allocation11 + $0x18] sm:$0xff]  ;;  %v303_v11 = vld [vmem:[#allocation11] sm:$0xff]  ;;  %v220_v13 = vld [vmem:[#allocation9 + $0x10] sm:$0xff]  ;;  %s957_s20 = sshll.u32 %s1373_s3, 4  ;;  %s969_s9 = sshll.u32 %s1374_s7, 4  ;;  %s958_s20 = int_to_ptr.vmem [resolvable:$true] %s957_s20  ;;  %s970_s9 = int_to_ptr.vmem [resolvable:$true] %s969_s9 }
  0x53   :  { %1057 = vmatprep.subr.mxu0 %v1369_v1  ;;  %1068 = vmatprep.subr.mxu1 %v1369_v1  ;;  %v302_v12 = vld [vmem:[#allocation6] sm:$0x3]  ;;  %v219_v14 = vld [vmem:[#allocation9 + $0x8] sm:$0xff]  ;;  %v218_v15 = vld [vmem:[#allocation9] sm:$0xff]  ;;  %s1307_s16 = scalar_lea.vmem %s958_s20, 64  ;;  %p1312_p3 = scmp.lt.s32.totalorder %s958_s20, %s958_s20 }
  0x54   :  { %1058 = vmatpush3.msra.mxu0 %v134_v3  ;;  %1069 = vmatpush3.msra.mxu1 %v220_v13  ;;  %v990_v16 = vld [vmem:[%s1620_s4] ss:$0 sm:$0xff]  ;;  %v390_v22 = vld [vmem:[#allocation12 + $0x10] sm:$0xff]  ;;  %v389_v24 = vld [vmem:[#allocation12 + $0x8] sm:$0xff]  ;;  %p1308_p2 = scmp.ne.s32.totalorder %s958_s20, %s1307_s16  ;;  %p1313_p4 = scmp.lt.s32.totalorder %s1307_s16, %s1307_s16 }
  0x55   :  { %1059 = vmatprep.subr.mxu0 %v1369_v1  ;;  %1070 = vmatprep.subr.mxu1 %v1369_v1  ;;  %v391_v21 = vld [vmem:[#allocation12 + $0x18] sm:$0xff]  ;;  %v388_v27 = vld [vmem:[#allocation12] sm:$0xff]  ;;  %v523_v59 = vld [vmem:[#allocation8 + $0x30] sm:$0xff] }
  0x56   :  { %1060 = vmatpush3.msra.mxu0 %v133_v4  ;;  %1071 = vmatpush3.msra.mxu1 %v219_v14  ;;  %v994_v23 = vld [vmem:[%s1624_s8] ss:$0 sm:$0xff]  ;;  %v522_v60 = vld [vmem:[#allocation8 + $0x28] sm:$0xff]  ;;  %v521_v61 = vld [vmem:[#allocation8 + $0x20] sm:$0xff]  ;;  %p1314_p5 = por %p1313_p4, %p1312_p3 }
  0x57   :  { %1061 = vmatprep.subr.mxu0 %v1369_v1  ;;  %1072 = vmatprep.subr.mxu1 %v1369_v1  ;;  %v992_v32 = vld [vmem:[%s1622_s6] ss:$0 sm:$0xff]  ;;  %v609_v0 = vld [vmem:[#allocation9 + $0x30] sm:$0xff]  ;;  %v1000_v13 = vld [vmem:[%s1620_s4 + $0x1] ss:$0 sm:$0xff] }
  0x58   :  { %1062 = vmatpush3.msra.mxu0 %v132_v6  ;;  %1073 = vmatpush3.msra.mxu1 %v218_v15  ;;  %v996_v33 = vld [vmem:[%s1626_s10] ss:$0 sm:$0xff]  ;;  %v697_v6 = vld [vmem:[#allocation11 + $0x30] sm:$0xff]  ;;  %p1315_p6 = pnand %p1314_p5, %p1308_p2 }
  0x59   :  { %1064 = vmatmul.mubr.msk.f32.vlgmr.msra.gmra.mxu0 %vm143_vm1, %v131_v7  ;;  %1077 = vmatprep.subr.mxu0 %v1369_v1  ;;  %v487_v40 = vld [vmem:[%s1618_s2] sm:$0x3]  ;;  %v696_v7 = vld [vmem:[#allocation11 + $0x28] sm:$0xff] }
  0x5a   :  { %1078 = vmatpush3.msra.mxu0 %v306_v8  ;;  %1085 = vmatprep.mubr.msk.f32.mxu0 %vm1370_vm0, %v1369_v1  ;;  %v524_v58 = vld [vmem:[#allocation8 + $0x38] sm:$0xff]  ;;  %v695_v8 = vld [vmem:[#allocation11 + $0x20] sm:$0xff] }
  0x5b   :  { %1079 = vmatprep.subr.mxu0 %v1369_v1  ;;  %1088 = vmatprep.subr.mxu1 %v1369_v1  ;;  %v610_v63 = vld [vmem:[#allocation9 + $0x38] sm:$0xff] }
  0x5c   :  { %1080 = vmatpush3.msra.mxu0 %v305_v9  ;;  %v698_v4 = vld [vmem:[#allocation11 + $0x38] sm:$0xff] }
  0x5d   :  { %1081 = vmatprep.subr.mxu0 %v1369_v1  ;;  %v693_v9 = vld [vmem:[#allocation6 + $0x2] sm:$0x3] }
  0x5e   :  { %1082 = vmatpush3.msra.mxu0 %v304_v10  ;;  %v608_v10 = vld [vmem:[#allocation9 + $0x28] sm:$0xff] }
  0x5f   :  { %1083 = vmatprep.subr.mxu0 %v1369_v1 }
  0x60   :  { %1084 = vmatpush3.msra.mxu0 %v303_v11  ;;  %v607_v11 = vld [vmem:[#allocation9 + $0x20] sm:$0xff] }
  0x61   :  { %1086 = vmatmul.mubr.msk.f32.vlgmr.msra.gmra.mxu0 %vm143_vm1, %v302_v12  ;;  %1099 = vmatprep.subr.mxu0 %v1369_v1  ;;  %v1012_v12 = vld [vmem:[%s1618_s2 + $0x2] sm:$0x3] }
  0x62   :  { %1107 = vmatprep.mubr.msk.f32.mxu0 %vm1370_vm0, %v1369_v1  ;;  %1100 = vmatpush3.msra.mxu0 %v524_v58 }
  0x63   :  { %1101 = vmatprep.subr.mxu0 %v1369_v1 }
  0x64   :  { %1102 = vmatpush3.msra.mxu0 %v523_v59 }
  0x65   :  { %1103 = vmatprep.subr.mxu0 %v1369_v1 }
  0x66   :  { %1104 = vmatpush3.msra.mxu0 %v522_v60 }
  0x67   :  { %1105 = vmatprep.subr.mxu0 %v1369_v1 }
  0x68   :  { %1106 = vmatpush3.msra.mxu0 %v521_v61 }
  0x69   :  { %1121 = vmatprep.subr.mxu0 %v1369_v1 }
 0x119   :  { %v213_v17 = vpop.f32.mrf.mxu0 }
 0x11a   :  { %v214_v18 = vadd.f32 %v990_v16, %v213_v17 }
 0x11b   :  { %v1065_v19 = vpop.f32.mrf.mxu0 }
 0x11c   :  { %v217_v20 = vmax.f32 %v214_v18, 0.0  ;;  %v785_v18 = vld [vmem:[#allocation12 + $0x38] sm:$0xff]  ;;  %v784_v19 = vld [vmem:[#allocation12 + $0x30] sm:$0xff] }
 0x11e   :  { %1075 = vmatmul.mubr.msk.f32.vlgmr.msra.gmra.mxu1 %vm143_vm1, %v217_v20  ;;  %v1006_v20 = vld [vmem:[%s1624_s8 + $0x1] ss:$0 sm:$0xff] }
 0x11f   :  { %1089 = vmatpush3.msra.mxu1 %v391_v21  ;;  %1096 = vmatprep.mubr.msk.f32.mxu1 %vm1370_vm0, %v1369_v1  ;;  %v783_v21 = vld [vmem:[#allocation12 + $0x28] sm:$0xff] }
 0x120   :  { %1090 = vmatprep.subr.mxu1 %v1369_v1 }
 0x121   :  { %v383_v25 = vpop.f32.mrf.mxu0  ;;  %1091 = vmatpush3.msra.mxu1 %v390_v22 }
 0x122   :  { %v384_v26 = vadd.f32 %v994_v23, %v383_v25  ;;  %1092 = vmatprep.subr.mxu1 %v1369_v1 }
 0x123   :  { %v1087_v28 = vpop.f32.mrf.mxu0  ;;  %1093 = vmatpush3.msra.mxu1 %v389_v24  ;;  %v782_v24 = vld [vmem:[#allocation12 + $0x20] sm:$0xff] }
 0x124   :  { %v387_v29 = vmax.f32 %v384_v26, 0.0  ;;  %1094 = vmatprep.subr.mxu1 %v1369_v1 }
 0x125   :  { %1095 = vmatpush3.msra.mxu1 %v388_v27 }
 0x126   :  { %1097 = vmatmul.mubr.msk.f32.vlgmr.msra.gmra.mxu1 %vm143_vm1, %v387_v29  ;;  %1110 = vmatprep.subr.mxu1 %v1369_v1  ;;  %v1003_v29 = vld [vmem:[%s1622_s6 + $0x1] ss:$0 sm:$0xff] }
 0x127   :  { %1118 = vmatprep.mubr.msk.f32.mxu1 %vm1370_vm0, %v1369_v1  ;;  %1111 = vmatpush3.msra.mxu1 %v610_v63 }
 0x128   :  { %1112 = vmatprep.subr.mxu1 %v1369_v1 }
 0x129   :  { %1113 = vmatpush3.msra.mxu1 %v609_v0 }
 0x12a   :  { %1114 = vmatprep.subr.mxu1 %v1369_v1 }
 0x12b   :  { %1115 = vmatpush3.msra.mxu1 %v608_v10 }
 0x12c   :  { %1116 = vmatprep.subr.mxu1 %v1369_v1 }
 0x12d   :  { %1117 = vmatpush3.msra.mxu1 %v607_v11 }
 0x12e   :  { %1132 = vmatprep.subr.mxu1 %v1369_v1 }
 0x1de   :  { %v298_v30 = vpop.f32.mrf.mxu1 }
 0x1df   :  { %v299_v35 = vadd.f32 %v992_v32, %v298_v30  ;;  %v1009_v30 = vld [vmem:[%s1626_s10 + $0x1] ss:$0 sm:$0xff] }
 0x1e0   :  { %v1076_v31 = vpop.f32.mrf.mxu1 }
 0x1e6   :  { %v468_v34 = vpop.f32.mrf.mxu1 }
 0x1e7   :  { %v469_v36 = vadd.f32 %v996_v33, %v468_v34 }
 0x1e8   :  { %v1098_v37 = vpop.f32.mrf.mxu1 }
 0x1e9   :  { %v472_v38 = vadd.f32 %v469_v36, %v299_v35 }
 0x1eb   :  { %1159 = vtanh.f32 %v472_v38  ;;  %v473_v41 = vsub.f32 0.0, %v472_v38  ;;  %v998_v48 = vadd.f32 -1.0, %v472_v38 }
 0x1ed   :  { %v474_v42 = vmul.f32 1.442695, %v473_v41  ;;  %v480_v49 = vsub.f32 0.0, %v998_v48 }
 0x1ef   :  { %1161 = vpow2.f32 %v474_v42  ;;  %v481_v50 = vmul.f32 1.442695, %v480_v49 }
 0x1f8   :  { %v1160_v39 = vpop.eup %1159 }
 0x1f9   :  { %494 = vrot.lane.b32.xlu0 %v1160_v39, %s1360_s23 }
 0x1fc   :  { %v1162_v43 = vpop.eup %1161 }
 0x1fd   :  { %489 = vrot.lane.b32.xlu0 %v487_v40, %s1360_s23  ;;  %v476_v44 = vadd.f32 1.0, %v1162_v43  ;;  %v1013_v43 = vld [vmem:[%s1627_s11] ss:$0 sm:$0xff]  ;;  %s1372_s11 = smov 96  }
 0x1ff   :  { %1163 = vrcp.f32 %v476_v44 }
 0x200   :  { %1165 = vpow2.f32 %v481_v50 }
 0x20c   :  { %v1164_v45 = vpop.eup %1163 }
 0x20d   :  { %v1166_v51 = vpop.eup %1165 }
 0x20e   :  { %v483_v52 = vadd.f32 1.0, %v1166_v51 }
 0x210   :  { %1167 = vrcp.f32 %v483_v52 }
 0x21d   :  { %v1168_v54 = vpop.eup %1167 }
 0x26b   :  { %v495_v46 = vpop.permute.xlu0 %494 }
 0x26c   :  { %v497_v47 = vmul.f32 %v1164_v45, %v495_v46 }
 0x26e   :  { %499 = vrot.lane.b32.xlu1 %v497_v47, %s1360_s23 }
 0x26f   :  { %v490_v53 = vpop.permute.xlu0 %489 }
 0x270   :  { %v492_v55 = vmul.f32 %v1168_v54, %v490_v53 }
 0x2e0   :  { %v500_v56 = vpop.permute.xlu1 %499 }
 0x2e1   :  { %v1543_v57 = vadd.f32 %v500_v56, %v492_v55 }
 0x2e3   :  { %1169 = vtanh.f32 %v1543_v57 }
 0x2f0   :  { %v1170_v62 = vpop.eup %1169 }
 0x2f1   :  { %505 = vrot.lane.b32.xlu1 %v1170_v62, %s1360_s23 }
 0x363   :  { %v506_v2 = vpop.permute.xlu1 %505 }
 0x364   :  { %v508_v3 = vmul.f32 %v1164_v45, %v506_v2 }
 0x366   :  { %510 = vrot.lane.b32.xlu0 %v508_v3, %s1371_s5 }
 0x36a   :  { %885 = vrot.lane.b32.xlu0 %v1012_v12, %s1360_s23 }
 0x3d8   :  { %v511_v5 = vpop.permute.xlu0 %510 }
 0x3d9   :  { %514 = vst.msk [vmem:[#allocation14] sm:$0x3] %vm513_vm2, %v511_v5  ;;  %1108 = vmatmul.mubr.msk.f32.vlgmr.msra.gmra.mxu0 %vm143_vm1, %v511_v5 }
 0x3da   :  { %1122 = vmatpush3.msra.mxu0 %v698_v4  ;;  %1129 = vmatprep.mubr.msk.f32.mxu0 %vm1370_vm0, %v1369_v1 }
 0x3db   :  { %1123 = vmatprep.subr.mxu0 %v1369_v1 }
 0x3dc   :  { %1124 = vmatpush3.msra.mxu0 %v697_v6  ;;  %v886_v50 = vpop.permute.xlu0 %885 }
 0x3dd   :  { %1125 = vmatprep.subr.mxu0 %v1369_v1 }
 0x3de   :  { %1126 = vmatpush3.msra.mxu0 %v696_v7 }
 0x3df   :  { %1127 = vmatprep.subr.mxu0 %v1369_v1 }
 0x3e0   :  { %1128 = vmatpush3.msra.mxu0 %v695_v8 }
 0x3e1   :  { %1130 = vmatmul.mubr.msk.f32.vlgmr.msra.gmra.mxu0 %vm143_vm1, %v693_v9 }
 0x499   :  { %v601_v14 = vpop.f32.mrf.mxu0 }
 0x49a   :  { %v602_v15 = vadd.f32 %v1000_v13, %v601_v14 }
 0x49b   :  { %v1109_v16 = vpop.f32.mrf.mxu0 }
 0x49c   :  { %v605_v17 = vmax.f32 %v602_v15, 0.0 }
 0x49e   :  { %1119 = vmatmul.mubr.msk.f32.vlgmr.msra.gmra.mxu1 %vm143_vm1, %v605_v17 }
 0x49f   :  { %1133 = vmatpush3.msra.mxu1 %v785_v18  ;;  %1140 = vmatprep.mubr.msk.f32.mxu1 %vm1370_vm0, %v1369_v1 }
 0x4a0   :  { %1134 = vmatprep.subr.mxu1 %v1369_v1 }
 0x4a1   :  { %v776_v22 = vpop.f32.mrf.mxu0  ;;  %1135 = vmatpush3.msra.mxu1 %v784_v19 }
 0x4a2   :  { %v777_v23 = vadd.f32 %v1006_v20, %v776_v22  ;;  %1136 = vmatprep.subr.mxu1 %v1369_v1 }
 0x4a3   :  { %v1131_v25 = vpop.f32.mrf.mxu0  ;;  %1137 = vmatpush3.msra.mxu1 %v783_v21 }
 0x4a4   :  { %v780_v26 = vmax.f32 %v777_v23, 0.0  ;;  %1138 = vmatprep.subr.mxu1 %v1369_v1 }
 0x4a5   :  { %1139 = vmatpush3.msra.mxu1 %v782_v24 }
 0x4a6   :  { %1141 = vmatmul.mubr.msk.f32.vlgmr.msra.gmra.mxu1 %vm143_vm1, %v780_v26 }
 0x55e   :  { %v688_v27 = vpop.f32.mrf.mxu1 }
 0x55f   :  { %v689_v32 = vadd.f32 %v1003_v29, %v688_v27 }
 0x560   :  { %v1120_v28 = vpop.f32.mrf.mxu1 }
 0x566   :  { %v863_v31 = vpop.f32.mrf.mxu1 }
 0x567   :  { %v864_v33 = vadd.f32 %v1009_v30, %v863_v31 }
 0x568   :  { %v1142_v34 = vpop.f32.mrf.mxu1 }
 0x569   :  { %v867_v35 = vadd.f32 %v864_v33, %v689_v32 }
 0x56b   :  { %1171 = vtanh.f32 %v867_v35  ;;  %v868_v36 = vsub.f32 0.0, %v867_v35  ;;  %v1011_v44 = vadd.f32 -1.0, %v867_v35 }
 0x56d   :  { %v869_v37 = vmul.f32 1.442695, %v868_v36  ;;  %v875_v45 = vsub.f32 0.0, %v1011_v44 }
 0x56f   :  { %1173 = vpow2.f32 %v869_v37  ;;  %v876_v46 = vmul.f32 1.442695, %v875_v45 }
 0x578   :  { %v1172_v1 = vpop.eup %1171 }
 0x579   :  { %890 = vrot.lane.b32.xlu1 %v1172_v1, %s1360_s23 }
 0x57c   :  { %v1174_v38 = vpop.eup %1173 }
 0x57d   :  { %v871_v39 = vadd.f32 1.0, %v1174_v38 }
 0x57f   :  { %1175 = vrcp.f32 %v871_v39 }
 0x580   :  { %1177 = vpow2.f32 %v876_v46 }
 0x58c   :  { %v1176_v40 = vpop.eup %1175 }
 0x58d   :  { %v1178_v47 = vpop.eup %1177 }
 0x58e   :  { %v878_v48 = vadd.f32 1.0, %v1178_v47 }
 0x590   :  { %1179 = vrcp.f32 %v878_v48 }
 0x59d   :  { %v1180_v49 = vpop.eup %1179 }
 0x59e   :  { %v888_v51 = vmul.f32 %v1180_v49, %v886_v50 }
 0x5eb   :  { %v891_v41 = vpop.permute.xlu1 %890 }
 0x5ec   :  { %v893_v42 = vmul.f32 %v1176_v40, %v891_v41 }
 0x5ee   :  { %895 = vrot.lane.b32.xlu1 %v893_v42, %s1360_s23 }
 0x5f2   :  { %923 = vrot.lane.b32.xlu1 %v1013_v43, %s1371_s5 }
 0x660   :  { %v896_v52 = vpop.permute.xlu1 %895 }
 0x661   :  { %v898_v53 = vadd.f32 %v896_v52, %v888_v51 }
 0x663   :  { %1181 = vtanh.f32 %v898_v53 }
 0x664   :  { %v924_v56 = vpop.permute.xlu1 %923 }
 0x670   :  { %v1182_v54 = vpop.eup %1181 }
 0x671   :  { %901 = vrot.lane.b32.xlu0 %v1182_v54, %s1360_s23 }
 0x6e3   :  { %v902_v55 = vpop.permute.xlu0 %901 }
 0x6e4   :  { %v904_v58 = vmul.f32 %v1176_v40, %v902_v55 }
 0x6e6   :  { %v926_v59 = vmul.f32 %v924_v56, %v904_v58 }
 0x6e8   :  { %928 = vrot.lane.b32.xlu0 %v926_v59, %s1371_s5 }
 0x6ec   :  { %516 = vrot.lane.b32.xlu0 %v1543_v57, %s1372_s11 }
 0x6f0   :  { %906 = vrot.lane.b32.xlu0 %v904_v58, %s1371_s5 }
 0x6f4   :  { %912 = vrot.lane.b32.xlu0 %v898_v53, %s1372_s11 }
 0x75a   :  { %v929_v60 = vpop.permute.xlu0 %928 }
 0x75b   :  { %v931_v61 = vsel %vm513_vm2, %v929_v60, 0.0 }
 0x75c   :  { %932 = vadd.xlane.f32.xlu1 %v931_v61 }
 0x75e   :  { %v517_v62 = vpop.permute.xlu0 %516 }
 0x75f   :  { %519 = vst.msk [vmem:[#allocation15] sm:$0x3] %vm513_vm2, %v517_v62 }
 0x762   :  { %v907_v63 = vpop.permute.xlu0 %906 }
 0x763   :  { %910 = vst.msk [vmem:[#allocation14 + $0x2] sm:$0x3] %vm513_vm2, %v907_v63 }
 0x766   :  { %v913_v0 = vpop.permute.xlu0 %912 }
 0x767   :  { %916 = vst.msk [vmem:[#allocation15 + $0x2] sm:$0x3] %vm513_vm2, %v913_v0 }
 0x768   :  { %1318 = shalt.err (!%p1315_p6)
}
 0x769   :  { %963 = dma.vmem_to_hbm [thread:$0]  %s958_s20, 64, %s1630_s14, [#allocation5], %s1360_s23, %s1360_s23, %s1361_s24  }
 0x76a   :  { %s1327_s22 = scalar_lea.vmem %s970_s9, 64  ;;  %p1332_p8 = scmp.lt.s32.totalorder %s970_s9, %s970_s9 }
 0x76b   :  { %p1328_p7 = scmp.ne.s32.totalorder %s970_s9, %s1327_s22  ;;  %p1333_p9 = scmp.lt.s32.totalorder %s1327_s22, %s1327_s22 }
 0x76d   :  { %p1334_p10 = por %p1333_p9, %p1332_p8 }
 0x76f   :  { %p1335_p11 = pnand %p1334_p10, %p1328_p7 }
 0x771   :  { %1338 = shalt.err (!%p1335_p11)
}
 0x772   :  { %975 = dma.vmem_to_hbm [thread:$0]  %s970_s9, 64, %s1631_s15, [#allocation16], %s1360_s23, %s1360_s23, %s1361_s24   ;;  %v1014_v57 = vld [vmem:[#allocation2] ss:$0 sm:$0xff]  ;;  %vm948_vm3 = vcmask 1024  }
 0x7e5   :  { %v933_v2 = vpop.xlane.xlu1 %932 }
 0x7e6   :  { %v941_v3 = vadd.f32 %v1014_v57, %v933_v2 }
 0x7e8   :  { %v942_v4 = vsub.f32 0.0, %v941_v3 }
 0x7ea   :  { %v943_v5 = vmul.f32 1.442695, %v942_v4 }
 0x7ec   :  { %1183 = vpow2.f32 %v943_v5 }
 0x7f9   :  { %v1184_v6 = vpop.eup %1183 }
 0x7fa   :  { %v945_v7 = vadd.f32 1.0, %v1184_v6 }
 0x7fc   :  { %1185 = vrcp.f32 %v945_v7 }
 0x809   :  { %v1186_v8 = vpop.eup %1185 }
 0x80a   :  { %949 = vst.msk [vmem:[%s1629_s13] sm:$0x3] %vm948_vm3, %v1186_v8 }
 0x80b   :  { %1355 = dma.done.wait [#allocation5], 64  }
 0x80c   :  { %1356 = vsyncadd [#allocation5], 4294967232 }
 0x80d   :  { %1357 = dma.done.wait [#allocation16], 64  }
 0x80e   :  { %1358 = vsyncadd [#allocation16], 4294967232 }
 0x80f   :  { %984 = vsyncpa [#allocation4], 1 }
 0x810   :  { %985 = vsyncpa [#allocation7], 1 }
 0x811   :  { %986 = vsyncpa [#allocation10], 1 }
 0x812   :  { %987 = vsyncpa [#allocation13], 1 }
 0x813   :  { %988 = vsyncpa [#allocation5], 1 }
 0x814   :  { %989 = vsyncpa [#allocation16], 1 }

</bundles_post_ra>
